<compile_context>
chip_gen: v5e
topology: v5e:2x2
jax: 0.10.0
libtpu: 0.0.40
codegen_flags: <defaults>
</compile_context>

<pallas_src>
import jax
import jax.numpy as jnp
from jax.experimental import pallas as pl
from jax.experimental.pallas import tpu as pltpu

FUTURE_WINDOW = 2
HIDDEN_SIZE = 64
INPUT_FEATURES = 2


def _make_lstm_kernel(T, B, BP, H, F, O):
    """Build a single-shot LSTM+FC kernel for static (T, B, BP, H, F, O)."""

    def kernel(x_ref, p_ref, out_ref):
        # x_ref  : (T*BP, F)  time-major, batch zero-padded to BP (sublane mult.)
        # p_ref  : (2H+8, 4H) packed parameter slab, gate columns [i, f, o, g]:
        #            rows [0, H)        W_hh^T
        #            rows [H, H+F)      W_ih^T
        #            row  H+F           b_ih + b_hh
        #            row  H+F+1         fc bias      (first O lanes, rest 0)
        #            rows [H+8, 2H+8)   fc weight^T  (first O cols,  rest 0)
        # out_ref: (B, O)

        # --- hoisted, off the serial chain ---------------------------------
        whh_bf = p_ref[0:H, :].astype(jnp.bfloat16)            # reused every step
        w_in = [p_ref[H + k:H + k + 1, :] for k in range(F)]   # F rows of (1, 4H)
        b = p_ref[H + F:H + F + 1, :]                          # (1, 4H)
        bfc = p_ref[H + F + 1:H + F + 2, :]                    # (1, 4H)
        wfc = p_ref[H + 8:2 * H + 8, :]                        # (H, 4H)

        x = x_ref[...]                                         # (T*BP, F)
        # K=F(=2) input projection on the VPU: broadcast multiply-adds with the
        # bias folded in, one (T*BP, 4H) slab for the whole sequence.
        gx = b
        for k in range(F):
            gx = gx + x[:, k:k + 1] * w_in[k]                  # (T*BP, 4H)

        h = jnp.zeros((BP, H), jnp.float32)
        c = jnp.zeros((BP, H), jnp.float32)

        # --- recurrence: fully unrolled (static, small T) -------------------
        # Per-step: one bf16 MXU pass (W_hh stays in VMEM/vregs, never re-DMAd),
        # gate transcendentals on the EUP, elementwise state update on the VPU.
        # TODO(synk): for larger T switch to lax.fori_loop(..., unroll=k) with
        # pl.ds(pl.multiple_of(t*BP, BP), BP) indexing; explicit weight-stationary
        # MXU driving (pltpu.matmul_push_rhs/acc_lhs/pop) is a further option but
        # jnp.dot is kept for portability.
        for t in range(T):
            gates = gx[t * BP:(t + 1) * BP, :] + jnp.dot(       # sublane-aligned
                h.astype(jnp.bfloat16), whh_bf,
                preferred_element_type=jnp.float32)             # (BP, 4H)

            # [i, f, o] are one contiguous 3H span -> single sigmoid; g is the
            # trailing H lanes -> single tanh.
            sig = jax.nn.sigmoid(gates[:, :3 * H])
            i_g = sig[:, 0 * H:1 * H]
            f_g = sig[:, 1 * H:2 * H]
            o_g = sig[:, 2 * H:3 * H]
            g_g = jnp.tanh(gates[:, 3 * H:])

            c = f_g * c + i_g * g_g
            h = o_g * jnp.tanh(c)

        # Dropout(p=0.3) is identity in eval mode.
        # TODO(synk): training-mode dropout (Bernoulli mask via pltpu.prng_*) not emitted.
        logits = jnp.dot(h, wfc, preferred_element_type=jnp.float32) + bfc  # (BP, 4H)
        out_ref[...] = logits[:B, :O].astype(out_ref.dtype)

    return kernel


def _reorder_gates(w):
    """Reorder PyTorch gate blocks [i, f, g, o] -> [i, f, o, g] along axis 0."""
    i, f, g, o = jnp.split(w, 4, axis=0)
    return jnp.concatenate([i, f, o, g], axis=0)


def lstm_model_forward(x_btf, params):
    """x_btf: (B, T, F) float32 (PyTorch batch_first layout) -> (B, future_window)."""
    B, T, F = x_btf.shape
    H = params["w_hh"].shape[1]          # w_hh: (4H, H)
    O = params["w_fc"].shape[0]          # w_fc: (O, H)
    BP = ((B + 7) // 8) * 8              # sublane-padded batch
    assert F + 2 <= 8, "packed-parameter layout assumes F <= 6"

    # Gate-block reorder + transposes (layout plumbing, done once in XLA).
    wih_t = _reorder_gates(params["w_ih"]).T                   # (F, 4H)
    whh_t = _reorder_gates(params["w_hh"]).T                   # (H, 4H)
    bias = _reorder_gates(params["b_ih"] + params["b_hh"])     # (4H,)

    # Pack every parameter into one lane/sublane-aligned slab -> single DMA.
    packed = jnp.zeros((2 * H + 8, 4 * H), jnp.float32)
    packed = packed.at[0:H, :].set(whh_t)
    packed = packed.at[H:H + F, :].set(wih_t)
    packed = packed.at[H + F, :].set(bias)
    packed = packed.at[H + F + 1, :O].set(params["b_fc"])
    packed = packed.at[H + 8:2 * H + 8, :O].set(params["w_fc"].T)

    # Time-major, batch zero-padded to BP (padded rows never reach the output).
    x_tbf = jnp.transpose(x_btf, (1, 0, 2))                    # (T, B, F)
    x_pad = jnp.pad(x_tbf, ((0, 0), (0, BP - B), (0, 0)))      # (T, BP, F)
    x_flat = x_pad.reshape(T * BP, F)

    kernel = _make_lstm_kernel(T, B, BP, H, F, O)

    vmem = pl.BlockSpec(memory_space=pltpu.MemorySpace.VMEM)   # whole array, VMEM-resident
    out = pl.pallas_call(
        kernel,
        out_shape=jax.ShapeDtypeStruct((B, O), jnp.float32),
        in_specs=[vmem, vmem],
        out_specs=vmem,
    )(x_flat, packed)
    return out


def init_params(key, input_size=INPUT_FEATURES, hidden_size=HIDDEN_SIZE,
                output_size=FUTURE_WINDOW):
    """Deterministic synthetic parameters matching nn.LSTM / nn.Linear shapes."""
    ks = jax.random.split(key, 6)
    k = 1.0 / jnp.sqrt(hidden_size)
    u = lambda kk, shape: jax.random.uniform(kk, shape, jnp.float32, -k, k)
    return {
        "w_ih": u(ks[0], (4 * hidden_size, input_size)),
        "w_hh": u(ks[1], (4 * hidden_size, hidden_size)),
        "b_ih": u(ks[2], (4 * hidden_size,)),
        "b_hh": u(ks[3], (4 * hidden_size,)),
        "w_fc": u(ks[4], (output_size, hidden_size)),
        "b_fc": u(ks[5], (output_size,)),
    }


def _reference_forward(x_btf, params):
    """Pure-JAX f32 reference (lax.scan LSTM, canonical PyTorch gate order)."""
    B, T, F = x_btf.shape
    H = params["w_hh"].shape[1]
    wih_t = params["w_ih"].T
    whh_t = params["w_hh"].T
    bias = params["b_ih"] + params["b_hh"]

    def step(carry, x_t):
        h, c = carry
        gates = x_t @ wih_t + h @ whh_t + bias
        i = jax.nn.sigmoid(gates[:, 0 * H:1 * H])
        f = jax.nn.sigmoid(gates[:, 1 * H:2 * H])
        g = jnp.tanh(gates[:, 2 * H:3 * H])
        o = jax.nn.sigmoid(gates[:, 3 * H:4 * H])
        c = f * c + i * g
        h = o * jnp.tanh(c)
        return (h, c), None

    h0 = jnp.zeros((B, H), jnp.float32)
    (h, _), _ = jax.lax.scan(step, (h0, h0), jnp.transpose(x_btf, (1, 0, 2)))
    return h @ params["w_fc"].T + params["b_fc"]


if __name__ == "__main__":
    key = jax.random.PRNGKey(0)
    k_params, k_x = jax.random.split(key)

    B, T, F = 2, 8, INPUT_FEATURES
    params = init_params(k_params)
    x = jax.random.normal(k_x, (B, T, F), dtype=jnp.float32)

    fwd = jax.jit(lstm_model_forward)
    out = jax.block_until_ready(fwd(x, params))

    ref = _reference_forward(x, params)
    assert out.shape == (B, FUTURE_WINDOW)
    # bf16 recurrent matmul (deliberate precision tradeoff) -> looser tolerance
    # than the previous pure-f32 kernel's 1e-4.
    assert jnp.allclose(out, ref, atol=2e-2, rtol=2e-2), (out, ref)

    print("KERNEL_OK")
</pallas_src>

<mosaic_0001>
module attributes {stable_mosaic.version = 11 : i64} {
  func.func @kernel(%arg0: memref<64x2xf32, #tpu.memory_space<vmem>>, %arg1: memref<136x256xf32, #tpu.memory_space<vmem>>, %arg2: memref<2x2xf32, #tpu.memory_space<vmem>>) attributes {dimension_semantics = [], scalar_prefetch = 0 : i64, scratch_operands = 0 : i64, tpu.core_type = #tpu.core_type<tc>} {
    %c0 = arith.constant 0 : index
    %c0_0 = arith.constant 0 : index
    %0 = vector.load %arg1[%c0, %c0_0] : memref<136x256xf32, #tpu.memory_space<vmem>>, vector<64x256xf32>
    %1 = arith.truncf %0 : vector<64x256xf32> to vector<64x256xbf16>
    %c64 = arith.constant 64 : index
    %c0_1 = arith.constant 0 : index
    %2 = vector.load %arg1[%c64, %c0_1] : memref<136x256xf32, #tpu.memory_space<vmem>>, vector<1x256xf32>
    %c65 = arith.constant 65 : index
    %c0_2 = arith.constant 0 : index
    %3 = vector.load %arg1[%c65, %c0_2] : memref<136x256xf32, #tpu.memory_space<vmem>>, vector<1x256xf32>
    %c66 = arith.constant 66 : index
    %c0_3 = arith.constant 0 : index
    %4 = vector.load %arg1[%c66, %c0_3] : memref<136x256xf32, #tpu.memory_space<vmem>>, vector<1x256xf32>
    %c67 = arith.constant 67 : index
    %c0_4 = arith.constant 0 : index
    %5 = vector.load %arg1[%c67, %c0_4] : memref<136x256xf32, #tpu.memory_space<vmem>>, vector<1x256xf32>
    %c72 = arith.constant 72 : index
    %c0_5 = arith.constant 0 : index
    %6 = vector.load %arg1[%c72, %c0_5] : memref<136x256xf32, #tpu.memory_space<vmem>>, vector<64x256xf32>
    %c0_6 = arith.constant 0 : index
    %c0_7 = arith.constant 0 : index
    %7 = vector.load %arg0[%c0_6, %c0_7] : memref<64x2xf32, #tpu.memory_space<vmem>>, vector<64x2xf32>
    %8 = vector.extract_strided_slice %7 {offsets = [0, 0], sizes = [64, 1], strides = [1, 1]} : vector<64x2xf32> to vector<64x1xf32>
    %9 = vector.broadcast %8 : vector<64x1xf32> to vector<64x256xf32>
    %10 = vector.broadcast %2 : vector<1x256xf32> to vector<64x256xf32>
    %11 = arith.mulf %9, %10 : vector<64x256xf32>
    %12 = vector.broadcast %4 : vector<1x256xf32> to vector<64x256xf32>
    %13 = arith.addf %12, %11 : vector<64x256xf32>
    %14 = vector.extract_strided_slice %7 {offsets = [0, 1], sizes = [64, 1], strides = [1, 1]} : vector<64x2xf32> to vector<64x1xf32>
    %15 = vector.broadcast %14 : vector<64x1xf32> to vector<64x256xf32>
    %16 = vector.broadcast %3 : vector<1x256xf32> to vector<64x256xf32>
    %17 = arith.mulf %15, %16 : vector<64x256xf32>
    %18 = arith.addf %13, %17 : vector<64x256xf32>
    %cst = arith.constant 0.000000e+00 : f32
    %19 = vector.broadcast %cst : f32 to vector<8x64xf32>
    %cst_8 = arith.constant 0.000000e+00 : f32
    %20 = vector.broadcast %cst_8 : f32 to vector<8x64xf32>
    %21 = vector.extract_strided_slice %18 {offsets = [0, 0], sizes = [8, 256], strides = [1, 1]} : vector<64x256xf32> to vector<8x256xf32>
    %22 = arith.truncf %19 : vector<8x64xf32> to vector<8x64xbf16>
    %cst_9 = arith.constant dense<0.000000e+00> : vector<8x256xf32>
    %23 = tpu.matmul %22, %1, %cst_9 {dimension_numbers = #tpu.dot_dimension_numbers<[1], [0], [0], [1], [0, 0, 1, 1], [], []>} : vector<8x64xbf16>, vector<64x256xbf16>, vector<8x256xf32> -> vector<8x256xf32>
    %24 = arith.addf %21, %23 : vector<8x256xf32>
    %25 = vector.extract_strided_slice %24 {offsets = [0, 0], sizes = [8, 192], strides = [1, 1]} : vector<8x256xf32> to vector<8x192xf32>
    %26 = arith.negf %25 : vector<8x192xf32>
    %27 = math.exp %26 : vector<8x192xf32>
    %cst_10 = arith.constant 1.000000e+00 : f32
    %28 = vector.broadcast %cst_10 : f32 to vector<8x192xf32>
    %29 = arith.addf %28, %27 : vector<8x192xf32>
    %30 = arith.divf %28, %29 : vector<8x192xf32>
    %31 = vector.extract_strided_slice %30 {offsets = [0, 0], sizes = [8, 64], strides = [1, 1]} : vector<8x192xf32> to vector<8x64xf32>
    %32 = vector.extract_strided_slice %30 {offsets = [0, 64], sizes = [8, 64], strides = [1, 1]} : vector<8x192xf32> to vector<8x64xf32>
    %33 = vector.extract_strided_slice %30 {offsets = [0, 128], sizes = [8, 64], strides = [1, 1]} : vector<8x192xf32> to vector<8x64xf32>
    %34 = vector.extract_strided_slice %24 {offsets = [0, 192], sizes = [8, 64], strides = [1, 1]} : vector<8x256xf32> to vector<8x64xf32>
    %35 = math.tanh %34 : vector<8x64xf32>
    %36 = arith.mulf %32, %20 : vector<8x64xf32>
    %37 = arith.mulf %31, %35 : vector<8x64xf32>
    %38 = arith.addf %36, %37 : vector<8x64xf32>
    %39 = math.tanh %38 : vector<8x64xf32>
    %40 = arith.mulf %33, %39 : vector<8x64xf32>
    %41 = vector.extract_strided_slice %18 {offsets = [8, 0], sizes = [8, 256], strides = [1, 1]} : vector<64x256xf32> to vector<8x256xf32>
    %42 = arith.truncf %40 : vector<8x64xf32> to vector<8x64xbf16>
    %cst_11 = arith.constant dense<0.000000e+00> : vector<8x256xf32>
    %43 = tpu.matmul %42, %1, %cst_11 {dimension_numbers = #tpu.dot_dimension_numbers<[1], [0], [0], [1], [0, 0, 1, 1], [], []>} : vector<8x64xbf16>, vector<64x256xbf16>, vector<8x256xf32> -> vector<8x256xf32>
    %44 = arith.addf %41, %43 : vector<8x256xf32>
    %45 = vector.extract_strided_slice %44 {offsets = [0, 0], sizes = [8, 192], strides = [1, 1]} : vector<8x256xf32> to vector<8x192xf32>
    %46 = arith.negf %45 : vector<8x192xf32>
    %47 = math.exp %46 : vector<8x192xf32>
    %cst_12 = arith.constant 1.000000e+00 : f32
    %48 = vector.broadcast %cst_12 : f32 to vector<8x192xf32>
    %49 = arith.addf %48, %47 : vector<8x192xf32>
    %50 = arith.divf %48, %49 : vector<8x192xf32>
    %51 = vector.extract_strided_slice %50 {offsets = [0, 0], sizes = [8, 64], strides = [1, 1]} : vector<8x192xf32> to vector<8x64xf32>
    %52 = vector.extract_strided_slice %50 {offsets = [0, 64], sizes = [8, 64], strides = [1, 1]} : vector<8x192xf32> to vector<8x64xf32>
    %53 = vector.extract_strided_slice %50 {offsets = [0, 128], sizes = [8, 64], strides = [1, 1]} : vector<8x192xf32> to vector<8x64xf32>
    %54 = vector.extract_strided_slice %44 {offsets = [0, 192], sizes = [8, 64], strides = [1, 1]} : vector<8x256xf32> to vector<8x64xf32>
    %55 = math.tanh %54 : vector<8x64xf32>
    %56 = arith.mulf %52, %38 : vector<8x64xf32>
    %57 = arith.mulf %51, %55 : vector<8x64xf32>
    %58 = arith.addf %56, %57 : vector<8x64xf32>
    %59 = math.tanh %58 : vector<8x64xf32>
    %60 = arith.mulf %53, %59 : vector<8x64xf32>
    %61 = vector.extract_strided_slice %18 {offsets = [16, 0], sizes = [8, 256], strides = [1, 1]} : vector<64x256xf32> to vector<8x256xf32>
    %62 = arith.truncf %60 : vector<8x64xf32> to vector<8x64xbf16>
    %cst_13 = arith.constant dense<0.000000e+00> : vector<8x256xf32>
    %63 = tpu.matmul %62, %1, %cst_13 {dimension_numbers = #tpu.dot_dimension_numbers<[1], [0], [0], [1], [0, 0, 1, 1], [], []>} : vector<8x64xbf16>, vector<64x256xbf16>, vector<8x256xf32> -> vector<8x256xf32>
    %64 = arith.addf %61, %63 : vector<8x256xf32>
    %65 = vector.extract_strided_slice %64 {offsets = [0, 0], sizes = [8, 192], strides = [1, 1]} : vector<8x256xf32> to vector<8x192xf32>
    %66 = arith.negf %65 : vector<8x192xf32>
    %67 = math.exp %66 : vector<8x192xf32>
    %cst_14 = arith.constant 1.000000e+00 : f32
    %68 = vector.broadcast %cst_14 : f32 to vector<8x192xf32>
    %69 = arith.addf %68, %67 : vector<8x192xf32>
    %70 = arith.divf %68, %69 : vector<8x192xf32>
    %71 = vector.extract_strided_slice %70 {offsets = [0, 0], sizes = [8, 64], strides = [1, 1]} : vector<8x192xf32> to vector<8x64xf32>
    %72 = vector.extract_strided_slice %70 {offsets = [0, 64], sizes = [8, 64], strides = [1, 1]} : vector<8x192xf32> to vector<8x64xf32>
    %73 = vector.extract_strided_slice %70 {offsets = [0, 128], sizes = [8, 64], strides = [1, 1]} : vector<8x192xf32> to vector<8x64xf32>
    %74 = vector.extract_strided_slice %64 {offsets = [0, 192], sizes = [8, 64], strides = [1, 1]} : vector<8x256xf32> to vector<8x64xf32>
    %75 = math.tanh %74 : vector<8x64xf32>
    %76 = arith.mulf %72, %58 : vector<8x64xf32>
    %77 = arith.mulf %71, %75 : vector<8x64xf32>
    %78 = arith.addf %76, %77 : vector<8x64xf32>
    %79 = math.tanh %78 : vector<8x64xf32>
    %80 = arith.mulf %73, %79 : vector<8x64xf32>
    %81 = vector.extract_strided_slice %18 {offsets = [24, 0], sizes = [8, 256], strides = [1, 1]} : vector<64x256xf32> to vector<8x256xf32>
    %82 = arith.truncf %80 : vector<8x64xf32> to vector<8x64xbf16>
    %cst_15 = arith.constant dense<0.000000e+00> : vector<8x256xf32>
    %83 = tpu.matmul %82, %1, %cst_15 {dimension_numbers = #tpu.dot_dimension_numbers<[1], [0], [0], [1], [0, 0, 1, 1], [], []>} : vector<8x64xbf16>, vector<64x256xbf16>, vector<8x256xf32> -> vector<8x256xf32>
    %84 = arith.addf %81, %83 : vector<8x256xf32>
    %85 = vector.extract_strided_slice %84 {offsets = [0, 0], sizes = [8, 192], strides = [1, 1]} : vector<8x256xf32> to vector<8x192xf32>
    %86 = arith.negf %85 : vector<8x192xf32>
    %87 = math.exp %86 : vector<8x192xf32>
    %cst_16 = arith.constant 1.000000e+00 : f32
    %88 = vector.broadcast %cst_16 : f32 to vector<8x192xf32>
    %89 = arith.addf %88, %87 : vector<8x192xf32>
    %90 = arith.divf %88, %89 : vector<8x192xf32>
    %91 = vector.extract_strided_slice %90 {offsets = [0, 0], sizes = [8, 64], strides = [1, 1]} : vector<8x192xf32> to vector<8x64xf32>
    %92 = vector.extract_strided_slice %90 {offsets = [0, 64], sizes = [8, 64], strides = [1, 1]} : vector<8x192xf32> to vector<8x64xf32>
    %93 = vector.extract_strided_slice %90 {offsets = [0, 128], sizes = [8, 64], strides = [1, 1]} : vector<8x192xf32> to vector<8x64xf32>
    %94 = vector.extract_strided_slice %84 {offsets = [0, 192], sizes = [8, 64], strides = [1, 1]} : vector<8x256xf32> to vector<8x64xf32>
    %95 = math.tanh %94 : vector<8x64xf32>
    %96 = arith.mulf %92, %78 : vector<8x64xf32>
    %97 = arith.mulf %91, %95 : vector<8x64xf32>
    %98 = arith.addf %96, %97 : vector<8x64xf32>
    %99 = math.tanh %98 : vector<8x64xf32>
    %100 = arith.mulf %93, %99 : vector<8x64xf32>
    %101 = vector.extract_strided_slice %18 {offsets = [32, 0], sizes = [8, 256], strides = [1, 1]} : vector<64x256xf32> to vector<8x256xf32>
    %102 = arith.truncf %100 : vector<8x64xf32> to vector<8x64xbf16>
    %cst_17 = arith.constant dense<0.000000e+00> : vector<8x256xf32>
    %103 = tpu.matmul %102, %1, %cst_17 {dimension_numbers = #tpu.dot_dimension_numbers<[1], [0], [0], [1], [0, 0, 1, 1], [], []>} : vector<8x64xbf16>, vector<64x256xbf16>, vector<8x256xf32> -> vector<8x256xf32>
    %104 = arith.addf %101, %103 : vector<8x256xf32>
    %105 = vector.extract_strided_slice %104 {offsets = [0, 0], sizes = [8, 192], strides = [1, 1]} : vector<8x256xf32> to vector<8x192xf32>
    %106 = arith.negf %105 : vector<8x192xf32>
    %107 = math.exp %106 : vector<8x192xf32>
    %cst_18 = arith.constant 1.000000e+00 : f32
    %108 = vector.broadcast %cst_18 : f32 to vector<8x192xf32>
    %109 = arith.addf %108, %107 : vector<8x192xf32>
    %110 = arith.divf %108, %109 : vector<8x192xf32>
    %111 = vector.extract_strided_slice %110 {offsets = [0, 0], sizes = [8, 64], strides = [1, 1]} : vector<8x192xf32> to vector<8x64xf32>
    %112 = vector.extract_strided_slice %110 {offsets = [0, 64], sizes = [8, 64], strides = [1, 1]} : vector<8x192xf32> to vector<8x64xf32>
    %113 = vector.extract_strided_slice %110 {offsets = [0, 128], sizes = [8, 64], strides = [1, 1]} : vector<8x192xf32> to vector<8x64xf32>
    %114 = vector.extract_strided_slice %104 {offsets = [0, 192], sizes = [8, 64], strides = [1, 1]} : vector<8x256xf32> to vector<8x64xf32>
    %115 = math.tanh %114 : vector<8x64xf32>
    %116 = arith.mulf %112, %98 : vector<8x64xf32>
    %117 = arith.mulf %111, %115 : vector<8x64xf32>
    %118 = arith.addf %116, %117 : vector<8x64xf32>
    %119 = math.tanh %118 : vector<8x64xf32>
    %120 = arith.mulf %113, %119 : vector<8x64xf32>
    %121 = vector.extract_strided_slice %18 {offsets = [40, 0], sizes = [8, 256], strides = [1, 1]} : vector<64x256xf32> to vector<8x256xf32>
    %122 = arith.truncf %120 : vector<8x64xf32> to vector<8x64xbf16>
    %cst_19 = arith.constant dense<0.000000e+00> : vector<8x256xf32>
    %123 = tpu.matmul %122, %1, %cst_19 {dimension_numbers = #tpu.dot_dimension_numbers<[1], [0], [0], [1], [0, 0, 1, 1], [], []>} : vector<8x64xbf16>, vector<64x256xbf16>, vector<8x256xf32> -> vector<8x256xf32>
    %124 = arith.addf %121, %123 : vector<8x256xf32>
    %125 = vector.extract_strided_slice %124 {offsets = [0, 0], sizes = [8, 192], strides = [1, 1]} : vector<8x256xf32> to vector<8x192xf32>
    %126 = arith.negf %125 : vector<8x192xf32>
    %127 = math.exp %126 : vector<8x192xf32>
    %cst_20 = arith.constant 1.000000e+00 : f32
    %128 = vector.broadcast %cst_20 : f32 to vector<8x192xf32>
    %129 = arith.addf %128, %127 : vector<8x192xf32>
    %130 = arith.divf %128, %129 : vector<8x192xf32>
    %131 = vector.extract_strided_slice %130 {offsets = [0, 0], sizes = [8, 64], strides = [1, 1]} : vector<8x192xf32> to vector<8x64xf32>
    %132 = vector.extract_strided_slice %130 {offsets = [0, 64], sizes = [8, 64], strides = [1, 1]} : vector<8x192xf32> to vector<8x64xf32>
    %133 = vector.extract_strided_slice %130 {offsets = [0, 128], sizes = [8, 64], strides = [1, 1]} : vector<8x192xf32> to vector<8x64xf32>
    %134 = vector.extract_strided_slice %124 {offsets = [0, 192], sizes = [8, 64], strides = [1, 1]} : vector<8x256xf32> to vector<8x64xf32>
    %135 = math.tanh %134 : vector<8x64xf32>
    %136 = arith.mulf %132, %118 : vector<8x64xf32>
    %137 = arith.mulf %131, %135 : vector<8x64xf32>
    %138 = arith.addf %136, %137 : vector<8x64xf32>
    %139 = math.tanh %138 : vector<8x64xf32>
    %140 = arith.mulf %133, %139 : vector<8x64xf32>
    %141 = vector.extract_strided_slice %18 {offsets = [48, 0], sizes = [8, 256], strides = [1, 1]} : vector<64x256xf32> to vector<8x256xf32>
    %142 = arith.truncf %140 : vector<8x64xf32> to vector<8x64xbf16>
    %cst_21 = arith.constant dense<0.000000e+00> : vector<8x256xf32>
    %143 = tpu.matmul %142, %1, %cst_21 {dimension_numbers = #tpu.dot_dimension_numbers<[1], [0], [0], [1], [0, 0, 1, 1], [], []>} : vector<8x64xbf16>, vector<64x256xbf16>, vector<8x256xf32> -> vector<8x256xf32>
    %144 = arith.addf %141, %143 : vector<8x256xf32>
    %145 = vector.extract_strided_slice %144 {offsets = [0, 0], sizes = [8, 192], strides = [1, 1]} : vector<8x256xf32> to vector<8x192xf32>
    %146 = arith.negf %145 : vector<8x192xf32>
    %147 = math.exp %146 : vector<8x192xf32>
    %cst_22 = arith.constant 1.000000e+00 : f32
    %148 = vector.broadcast %cst_22 : f32 to vector<8x192xf32>
    %149 = arith.addf %148, %147 : vector<8x192xf32>
    %150 = arith.divf %148, %149 : vector<8x192xf32>
    %151 = vector.extract_strided_slice %150 {offsets = [0, 0], sizes = [8, 64], strides = [1, 1]} : vector<8x192xf32> to vector<8x64xf32>
    %152 = vector.extract_strided_slice %150 {offsets = [0, 64], sizes = [8, 64], strides = [1, 1]} : vector<8x192xf32> to vector<8x64xf32>
    %153 = vector.extract_strided_slice %150 {offsets = [0, 128], sizes = [8, 64], strides = [1, 1]} : vector<8x192xf32> to vector<8x64xf32>
    %154 = vector.extract_strided_slice %144 {offsets = [0, 192], sizes = [8, 64], strides = [1, 1]} : vector<8x256xf32> to vector<8x64xf32>
    %155 = math.tanh %154 : vector<8x64xf32>
    %156 = arith.mulf %152, %138 : vector<8x64xf32>
    %157 = arith.mulf %151, %155 : vector<8x64xf32>
    %158 = arith.addf %156, %157 : vector<8x64xf32>
    %159 = math.tanh %158 : vector<8x64xf32>
    %160 = arith.mulf %153, %159 : vector<8x64xf32>
    %161 = vector.extract_strided_slice %18 {offsets = [56, 0], sizes = [8, 256], strides = [1, 1]} : vector<64x256xf32> to vector<8x256xf32>
    %162 = arith.truncf %160 : vector<8x64xf32> to vector<8x64xbf16>
    %cst_23 = arith.constant dense<0.000000e+00> : vector<8x256xf32>
    %163 = tpu.matmul %162, %1, %cst_23 {dimension_numbers = #tpu.dot_dimension_numbers<[1], [0], [0], [1], [0, 0, 1, 1], [], []>} : vector<8x64xbf16>, vector<64x256xbf16>, vector<8x256xf32> -> vector<8x256xf32>
    %164 = arith.addf %161, %163 : vector<8x256xf32>
    %165 = vector.extract_strided_slice %164 {offsets = [0, 0], sizes = [8, 192], strides = [1, 1]} : vector<8x256xf32> to vector<8x192xf32>
    %166 = arith.negf %165 : vector<8x192xf32>
    %167 = math.exp %166 : vector<8x192xf32>
    %cst_24 = arith.constant 1.000000e+00 : f32
    %168 = vector.broadcast %cst_24 : f32 to vector<8x192xf32>
    %169 = arith.addf %168, %167 : vector<8x192xf32>
    %170 = arith.divf %168, %169 : vector<8x192xf32>
    %171 = vector.extract_strided_slice %170 {offsets = [0, 0], sizes = [8, 64], strides = [1, 1]} : vector<8x192xf32> to vector<8x64xf32>
    %172 = vector.extract_strided_slice %170 {offsets = [0, 64], sizes = [8, 64], strides = [1, 1]} : vector<8x192xf32> to vector<8x64xf32>
    %173 = vector.extract_strided_slice %170 {offsets = [0, 128], sizes = [8, 64], strides = [1, 1]} : vector<8x192xf32> to vector<8x64xf32>
    %174 = vector.extract_strided_slice %164 {offsets = [0, 192], sizes = [8, 64], strides = [1, 1]} : vector<8x256xf32> to vector<8x64xf32>
    %175 = math.tanh %174 : vector<8x64xf32>
    %176 = arith.mulf %172, %158 : vector<8x64xf32>
    %177 = arith.mulf %171, %175 : vector<8x64xf32>
    %178 = arith.addf %176, %177 : vector<8x64xf32>
    %179 = math.tanh %178 : vector<8x64xf32>
    %180 = arith.mulf %173, %179 : vector<8x64xf32>
    %cst_25 = arith.constant dense<0.000000e+00> : vector<8x256xf32>
    %181 = tpu.matmul %180, %6, %cst_25 {dimension_numbers = #tpu.dot_dimension_numbers<[1], [0], [0], [1], [0, 0, 1, 1], [], []>} : vector<8x64xf32>, vector<64x256xf32>, vector<8x256xf32> -> vector<8x256xf32>
    %182 = vector.broadcast %5 : vector<1x256xf32> to vector<8x256xf32>
    %183 = arith.addf %181, %182 : vector<8x256xf32>
    %184 = vector.extract_strided_slice %183 {offsets = [0, 0], sizes = [2, 2], strides = [1, 1]} : vector<8x256xf32> to vector<2x2xf32>
    %c0_26 = arith.constant 0 : index
    %c0_27 = arith.constant 0 : index
    %185 = vector.load %arg2[%c0_26, %c0_27] : memref<2x2xf32, #tpu.memory_space<vmem>>, vector<2x2xf32>
    tpu.vector_store %arg2[%c0_26, %c0_27], %184 {strides = array<i32>} : memref<2x2xf32, #tpu.memory_space<vmem>>, vector<2x2xf32>,
    return
  }
}

</mosaic_0001>

<bundles_post_ra>
// kernel: lstm_model_forward.1
= control target key start
LH: loop header
LB: loop body
LE: loop exit
PB: predicated region body
PF: predicated region fallthrough
CT: control target
= control target key end

     0   :  { %v1131_v7 = vmov 0   ;;  %v1132_v8 = vmov 1   ;;  %s1480_s0 = inlined_call_operand.vmem [shape: f32[64,2], index: 0, kind: input, shape index: {}]   ;;  %s1481_s1 = inlined_call_operand.vmem [shape: f32[136,256], index: 1, kind: input, shape index: {}]   ;;  %s1482_s2 = inlined_call_operand.hbm [shape: f32[2,2], index: 2, kind: output, shape index: {}]  }
   0x1   :  { %v25_v0 = vld [vmem:[%s1481_s1 + $0x60] sm:$0xff]  ;;  %v27_v1 = vld [vmem:[%s1481_s1 + $0x70] sm:$0xff]  ;;  %v26_v2 = vld [vmem:[%s1481_s1 + $0x68] sm:$0xff]  ;;  %999 = vset.pattern.permute.xlu0 %v1131_v7  ;;  %1002 = vset.pattern.permute.xlu1 %v1132_v8 }
   0x2   :  { %v1159_v3 = vpack.c.bf16 %v27_v1, %v25_v0  ;;  %v28_v4 = vld [vmem:[%s1481_s1 + $0x78] sm:$0xff]  ;;  %v21_v5 = vld [vmem:[%s1481_s1 + $0x40] sm:$0xff]  ;;  %v23_v6 = vld [vmem:[%s1481_s1 + $0x50] sm:$0xff]  ;;  %1001 = vset.pattern.permute.xlu2 %v1131_v7 }
   0x3   :  { %v1172_v9 = vpack.c.bf16 %v28_v4, %v26_v2  ;;  %v22_v10 = vld [vmem:[%s1481_s1 + $0x48] sm:$0xff]  ;;  %v24_v11 = vld [vmem:[%s1481_s1 + $0x58] sm:$0xff]  ;;  %v53_v12 = vld [vmem:[%s1480_s0] sm:$0xff]  ;;  %v1185_v13 = vpack.c.bf16 %v23_v6, %v21_v5 }
   0x4   :  { %220 = vmatpush.bf16.msra.mxu0 %v1159_v3  ;;  %63 = vperm.xlu0 %999, %v53_v12   ;;  %v1188_v14 = vpack.c.bf16 %v24_v11, %v22_v10  ;;  %v17_v15 = vld [vmem:[%s1481_s1 + $0x20] sm:$0xff]  ;;  %v19_v16 = vld [vmem:[%s1481_s1 + $0x30] sm:$0xff]  ;;  %v18_v17 = vld [vmem:[%s1481_s1 + $0x28] sm:$0xff] }
   0x5   :  { %233 = vmatpush.bf16.msra.mxu1 %v1172_v9  ;;  %308 = vmatpush.bf16.msra.mxu2 %v1159_v3  ;;  %v20_v18 = vld [vmem:[%s1481_s1 + $0x38] sm:$0xff] }
   0x6   :  { %321 = vmatpush.bf16.msra.mxu3 %v1172_v9 }
   0x7   :  { %7 = vsyncpa [#allocation3], 0  ;;  %v1205_v19 = vpack.c.bf16 %v19_v16, %v17_v15  ;;  %v1208_v20 = vpack.c.bf16 %v20_v18, %v18_v17  ;;  %v13_v21 = vld [vmem:[%s1481_s1] sm:$0xff]  ;;  %v15_v22 = vld [vmem:[%s1481_s1 + $0x10] sm:$0xff]  ;;  %s1133_s21 = smov 64   ;;  %vm212_vm8 = vcmask 523264  }
   0x8   :  { %221 = vmatpush.bf16.msra.mxu0 %v1185_v13  ;;  %v14_v23 = vld [vmem:[%s1481_s1 + $0x8] sm:$0xff]  ;;  %v16_v24 = vld [vmem:[%s1481_s1 + $0x18] sm:$0xff]  ;;  %v1225_v25 = vpack.c.bf16 %v15_v22, %v13_v21  ;;  %s1134_s25 = smov [#allocation2]   ;;  %s951_s29 = sshll.u32 %s1482_s2, 4  ;;  %s952_s29 = int_to_ptr.hbm [resolvable:$true] %s951_s29 }
   0x9   :  { %234 = vmatpush.bf16.msra.mxu1 %v1188_v14  ;;  %309 = vmatpush.bf16.msra.mxu2 %v1185_v13  ;;  %v1229_v26 = vpack.c.bf16 %v16_v24, %v14_v23  ;;  %v960_v28 = vld [vmem:[%s1481_s1 + $0x80] ss:$8 sm:$0x3]  ;;  %v962_v29 = vld [vmem:[%s1481_s1 + $0x82] ss:$8 sm:$0x3] }
   0xa   :  { %322 = vmatpush.bf16.msra.mxu3 %v1188_v14  ;;  %v1269_v30 = vperm.slane %v960_v28, 0  ;;  %v1271_v31 = vperm.slane %v960_v28, 1  ;;  %v961_v32 = vld [vmem:[%s1481_s1 + $0x81] ss:$8 sm:$0x3]  ;;  %v1277_v34 = vperm.slane %v962_v29, 0 }
   0xb   :  { %v1279_v35 = vperm.slane %v961_v32, 0  ;;  %v1282_v37 = vperm.slane %v962_v29, 1  ;;  %v1284_v39 = vperm.slane %v961_v32, 1  ;;  %v54_v17 = vld [vmem:[%s1480_s0 + $0x8] sm:$0xff]  ;;  %s949_s26 = sshll.u32 %s1134_s25, 4  ;;  %s950_s26 = int_to_ptr.vmem [resolvable:$true] %s949_s26 }
   0xc   :  { %222 = vmatpush.bf16.msra.mxu0 %v1205_v19  ;;  %1000 = vset.pattern.permute.xlu0 %v1132_v8 }
   0xd   :  { %235 = vmatpush.bf16.msra.mxu1 %v1208_v20  ;;  %144 = vperm.xlu0 %1000, %v53_v12  }
   0xe   :  { %310 = vmatpush.bf16.msra.mxu2 %v1205_v19  ;;  %323 = vmatpush.bf16.msra.mxu3 %v1208_v20 }
  0x10   :  { %223 = vmatpush.bf16.msra.mxu0 %v1225_v25 }
  0x11   :  { %236 = vmatpush.bf16.msra.mxu1 %v1229_v26 }
  0x12   :  { %311 = vmatpush.bf16.msra.mxu2 %v1225_v25  ;;  %324 = vmatpush.bf16.msra.mxu3 %v1229_v26 }
  0x13   :  { %224 = vmatmul.bf16.vlgmr.msra.gmra.mxu0 %v1131_v7 }
  0x14   :  { %396 = vmatpush.bf16.msrb.mxu0 %v1159_v3  ;;  %237 = vmatmul.bf16.vlgmr.msra.gmra.mxu1 %v1131_v7 }
  0x15   :  { %409 = vmatpush.bf16.msrb.mxu1 %v1172_v9 }
  0x16   :  { %497 = vmatpush.bf16.msrb.mxu3 %v1172_v9  ;;  %484 = vmatpush.bf16.msrb.mxu2 %v1159_v3 }
  0x18   :  { %397 = vmatpush.bf16.msrb.mxu0 %v1185_v13 }
  0x19   :  { %410 = vmatpush.bf16.msrb.mxu1 %v1188_v14 }
  0x1a   :  { %498 = vmatpush.bf16.msrb.mxu3 %v1188_v14  ;;  %485 = vmatpush.bf16.msrb.mxu2 %v1185_v13 }
  0x1c   :  { %398 = vmatpush.bf16.msrb.mxu0 %v1205_v19 }
  0x1d   :  { %411 = vmatpush.bf16.msrb.mxu1 %v1208_v20 }
  0x1e   :  { %499 = vmatpush.bf16.msrb.mxu3 %v1208_v20  ;;  %486 = vmatpush.bf16.msrb.mxu2 %v1205_v19 }
  0x20   :  { %399 = vmatpush.bf16.msrb.mxu0 %v1225_v25 }
  0x21   :  { %412 = vmatpush.bf16.msrb.mxu1 %v1229_v26 }
  0x22   :  { %500 = vmatpush.bf16.msrb.mxu3 %v1229_v26  ;;  %487 = vmatpush.bf16.msrb.mxu2 %v1225_v25 }
  0x24   :  { %572 = vmatpush.bf16.msra.mxu0 %v1159_v3 }
  0x25   :  { %585 = vmatpush.bf16.msra.mxu1 %v1172_v9 }
  0x28   :  { %573 = vmatpush.bf16.msra.mxu0 %v1185_v13 }
  0x29   :  { %586 = vmatpush.bf16.msra.mxu1 %v1188_v14 }
  0x2c   :  { %574 = vmatpush.bf16.msra.mxu0 %v1205_v19 }
  0x2d   :  { %587 = vmatpush.bf16.msra.mxu1 %v1208_v20 }
  0x30   :  { %575 = vmatpush.bf16.msra.mxu0 %v1225_v25 }
  0x31   :  { %588 = vmatpush.bf16.msra.mxu1 %v1229_v26 }
  0x76   :  { %v64_v27 = vpop.permute.xlu0 %63 }
  0x77   :  { %v106_v33 = vmul.f32 %v1269_v30, %v64_v27  ;;  %v107_v36 = vmul.f32 %v1271_v31, %v64_v27 }
  0x79   :  { %v127_v40 = vadd.f32 %v1277_v34, %v106_v33  ;;  %v128_v42 = vadd.f32 %v1282_v37, %v107_v36 }
  0x7f   :  { %v145_v38 = vpop.permute.xlu0 %144 }
  0x80   :  { %v180_v41 = vmul.f32 %v1279_v35, %v145_v38  ;;  %v181_v43 = vmul.f32 %v1284_v39, %v145_v38 }
  0x82   :  { %v196_v44 = vadd.f32 %v180_v41, %v127_v40  ;;  %v197_v46 = vadd.f32 %v181_v43, %v128_v42 }
  0x90   :  { %v225_v45 = vpop.f32.mrf.mxu0 }
  0x91   :  { %v242_v47 = vadd.f32 %v225_v45, %v196_v44  ;;  %v238_v48 = vpop.f32.mrf.mxu1 }
  0x92   :  { %v243_v49 = vadd.f32 %v238_v48, %v197_v46 }
  0x93   :  { %v964_v53 = vmul.f32 -1.442695, %v242_v47 }
  0x94   :  { %1009 = vtanh.f32 %v243_v49  ;;  %v965_v12 = vmul.f32 -1.442695, %v243_v49 }
  0x95   :  { %1011 = vpow2.f32 %v964_v53  ;;  %v55_v53 = vld [vmem:[%s1480_s0 + $0x10] sm:$0xff] }
  0x98   :  { %v227_v50 = vpop.f32.mrf.mxu0 }
  0x99   :  { %v240_v51 = vpop.f32.mrf.mxu1 }
  0x9a   :  { %v1010_v52 = vpop.eup %1009 }
  0x9b   :  { %285 = vrot.lane.b32.xlu1 %v1010_v52, %s1133_s21  ;;  %v1012_v54 = vpop.eup %1011 }
  0x9c   :  { %v250_v55 = vadd.f32 1.0, %v1012_v54 }
  0x9e   :  { %1013 = vrcp.f32 %v250_v55  ;;  %v263_v61 = vand.u32 2147483648, %v250_v55  ;;  %vm257_vm1 = vweird.f32 %v250_v55  ;;  %v261_v62 = vand.u32 2147483647, %v250_v55 }
  0xa0   :  { %v264_v0 = vor.u32 1.1754944e-38, %v263_v61  ;;  %vm262_vm3 = vcmp.eq.f32.partialorder %v261_v62, 8.507059e+37 }
  0xa4   :  { %v1014_v56 = vpop.eup %1013 }
  0xa5   :  { %v253_v57 = vmul.f32 %v1014_v56, %v250_v55  ;;  %vm258_vm0 = vweird.f32 %v1014_v56 }
  0xa6   :  { %vm259_vm2 = vmor %vm257_vm1, %vm258_vm0 }
  0xa7   :  { %v254_v58 = vsub.f32 1.0, %v253_v57 }
  0xa9   :  { %v255_v59 = vmul.f32 %v1014_v56, %v254_v58 }
  0xab   :  { %v256_v60 = vadd.f32 %v1014_v56, %v255_v59 }
  0xad   :  { %v260_v63 = vsel %vm259_vm2, %v1014_v56, %v256_v60 }
  0xae   :  { %v265_v2 = vsel %vm262_vm3, %v264_v0, %v260_v63 }
  0xaf   :  { %v283_v5 = vmul.f32 0.0, %v265_v2 }
 0x10d   :  { %v286_v1 = vpop.permute.xlu1 %285 }
 0x10e   :  { %v288_v4 = vmul.f32 %v286_v1, %v265_v2 }
 0x110   :  { %290 = vrot.lane.b32.xlu1 %v288_v4, %s1133_s21 }
 0x118   :  { %148 = vperm.xlu1 %1002, %v54_v17  }
 0x120   :  { %1003 = vset.pattern.permute.xlu1 %v1131_v7 }
 0x182   :  { %v291_v6 = vpop.permute.xlu1 %290 }
 0x183   :  { %v1292_v10 = vadd.f32 %v291_v6, %v283_v5 }
 0x185   :  { %1015 = vtanh.f32 %v1292_v10 }
 0x186   :  { %1017 = vpow2.f32 %v965_v12 }
 0x18a   :  { %v149_v43 = vpop.permute.xlu1 %148 }
 0x18b   :  { %v1016_v11 = vpop.eup %1015  ;;  %v183_v45 = vmul.f32 %v1284_v39, %v149_v43  ;;  %v182_v56 = vmul.f32 %v1279_v35, %v149_v43 }
 0x18c   :  { %296 = vrot.lane.b32.xlu2 %v1016_v11, %s1133_s21  ;;  %v1018_v15 = vpop.eup %1017 }
 0x18d   :  { %v251_v16 = vadd.f32 1.0, %v1018_v15 }
 0x18f   :  { %1019 = vrcp.f32 %v251_v16  ;;  %v278_v27 = vand.u32 2147483648, %v251_v16  ;;  %vm272_vm5 = vweird.f32 %v251_v16  ;;  %v276_v28 = vand.u32 2147483647, %v251_v16 }
 0x191   :  { %v279_v32 = vor.u32 1.1754944e-38, %v278_v27  ;;  %vm277_vm7 = vcmp.eq.f32.partialorder %v276_v28, 8.507059e+37 }
 0x194   :  { %68 = vperm.xlu2 %1001, %v54_v17  }
 0x195   :  { %v1020_v18 = vpop.eup %1019 }
 0x196   :  { %v268_v21 = vmul.f32 %v1020_v18, %v251_v16  ;;  %vm273_vm4 = vweird.f32 %v1020_v18 }
 0x197   :  { %vm274_vm6 = vmor %vm272_vm5, %vm273_vm4 }
 0x198   :  { %v269_v22 = vsub.f32 1.0, %v268_v21 }
 0x19a   :  { %v270_v23 = vmul.f32 %v1020_v18, %v269_v22 }
 0x19c   :  { %v271_v24 = vadd.f32 %v1020_v18, %v270_v23 }
 0x19e   :  { %v275_v29 = vsel %vm274_vm6, %v1020_v18, %v271_v24 }
 0x19f   :  { %v280_v33 = vsel %vm277_vm7, %v279_v32, %v275_v29 }
 0x1e6   :  { %v297_v36 = vpop.permute.xlu2 %296 }
 0x1e7   :  { %v299_v38 = vmul.f32 %v297_v36, %v280_v33 }
 0x1e9   :  { %v300_v40 = vpack.c.bf16 %v299_v38, %v299_v38 }
 0x1eb   :  { %966 = vmatmul.msk.bf16.vlgmr.msra.gmra.mxu2 %vm212_vm8, %v300_v40  ;;  %967 = vmatmul.msk.bf16.vlgmr.msra.gmra.mxu3 %vm212_vm8, %v300_v40 }
 0x1ec   :  { %673 = vmatpush.bf16.msra.mxu3 %v1172_v9  ;;  %660 = vmatpush.bf16.msra.mxu2 %v1159_v3 }
 0x1ee   :  { %v69_v41 = vpop.permute.xlu2 %68 }
 0x1ef   :  { %v109_v42 = vmul.f32 %v1271_v31, %v69_v41  ;;  %v108_v54 = vmul.f32 %v1269_v30, %v69_v41 }
 0x1f0   :  { %674 = vmatpush.bf16.msra.mxu3 %v1188_v14  ;;  %661 = vmatpush.bf16.msra.mxu2 %v1185_v13 }
 0x1f1   :  { %v130_v44 = vadd.f32 %v1282_v37, %v109_v42  ;;  %v129_v55 = vadd.f32 %v1277_v34, %v108_v54 }
 0x1f3   :  { %v199_v46 = vadd.f32 %v183_v45, %v130_v44  ;;  %v198_v57 = vadd.f32 %v182_v56, %v129_v55 }
 0x1f4   :  { %675 = vmatpush.bf16.msra.mxu3 %v1208_v20  ;;  %662 = vmatpush.bf16.msra.mxu2 %v1205_v19 }
 0x1f8   :  { %676 = vmatpush.bf16.msra.mxu3 %v1229_v26  ;;  %663 = vmatpush.bf16.msra.mxu2 %v1225_v25 }
 0x26e   :  { %v313_v47 = vpop.f32.mrf.mxu2  ;;  %v326_v48 = vpop.f32.mrf.mxu3 }
 0x26f   :  { %v331_v49 = vadd.f32 %v326_v48, %v199_v46  ;;  %v330_v58 = vadd.f32 %v313_v47, %v198_v57 }
 0x271   :  { %1021 = vtanh.f32 %v331_v49  ;;  %v968_v59 = vmul.f32 -1.442695, %v330_v58  ;;  %v969_v23 = vmul.f32 -1.442695, %v331_v49 }
 0x273   :  { %1023 = vpow2.f32 %v968_v59 }
 0x276   :  { %v315_v50 = vpop.f32.mrf.mxu2  ;;  %v328_v51 = vpop.f32.mrf.mxu3 }
 0x277   :  { %v1022_v52 = vpop.eup %1021 }
 0x278   :  { %373 = vrot.lane.b32.xlu2 %v1022_v52, %s1133_s21 }
 0x279   :  { %v1024_v60 = vpop.eup %1023 }
 0x27a   :  { %v338_v61 = vadd.f32 1.0, %v1024_v60 }
 0x27c   :  { %1025 = vrcp.f32 %v338_v61  ;;  %v351_v4 = vand.u32 2147483648, %v338_v61  ;;  %vm345_vm10 = vweird.f32 %v338_v61  ;;  %v349_v5 = vand.u32 2147483647, %v338_v61 }
 0x27e   :  { %v352_v11 = vor.u32 1.1754944e-38, %v351_v4  ;;  %vm350_vm12 = vcmp.eq.f32.partialorder %v349_v5, 8.507059e+37 }
 0x280   :  { %73 = vperm.xlu2 %1001, %v55_v53  }
 0x282   :  { %v1026_v62 = vpop.eup %1025 }
 0x283   :  { %v341_v63 = vmul.f32 %v1026_v62, %v338_v61  ;;  %vm346_vm9 = vweird.f32 %v1026_v62 }
 0x284   :  { %vm347_vm11 = vmor %vm345_vm10, %vm346_vm9 }
 0x285   :  { %v342_v0 = vsub.f32 1.0, %v341_v63 }
 0x287   :  { %v343_v1 = vmul.f32 %v1026_v62, %v342_v0 }
 0x288   :  { %1004 = vset.pattern.permute.xlu2 %v1132_v8 }
 0x289   :  { %v344_v2 = vadd.f32 %v1026_v62, %v343_v1 }
 0x28b   :  { %v348_v6 = vsel %vm347_vm11, %v1026_v62, %v344_v2 }
 0x28c   :  { %v353_v15 = vsel %vm350_vm12, %v352_v11, %v348_v6 }
 0x28d   :  { %v371_v17 = vmul.f32 %v353_v15, %v1292_v10 }
 0x2d2   :  { %v374_v12 = vpop.permute.xlu2 %373 }
 0x2d3   :  { %v376_v16 = vmul.f32 %v374_v12, %v353_v15 }
 0x2d5   :  { %378 = vrot.lane.b32.xlu0 %v376_v16, %s1133_s21 }
 0x2da   :  { %v74_v46 = vpop.permute.xlu2 %73 }
 0x2db   :  { %v111_v48 = vmul.f32 %v1271_v31, %v74_v46  ;;  %v110_v58 = vmul.f32 %v1269_v30, %v74_v46 }
 0x2dd   :  { %152 = vperm.xlu0 %1000, %v55_v53   ;;  %v132_v50 = vadd.f32 %v1282_v37, %v111_v48  ;;  %v131_v60 = vadd.f32 %v1277_v34, %v110_v58 }
 0x2e5   :  { %1005 = vset.pattern.permute.xlu0 %v1131_v7 }
 0x347   :  { %v379_v18 = vpop.permute.xlu0 %378 }
 0x348   :  { %v1324_v21 = vadd.f32 %v379_v18, %v371_v17 }
 0x34a   :  { %1027 = vtanh.f32 %v1324_v21 }
 0x34b   :  { %1029 = vpow2.f32 %v969_v23 }
 0x34f   :  { %v153_v47 = vpop.permute.xlu0 %152 }
 0x350   :  { %v1028_v22 = vpop.eup %1027  ;;  %v185_v49 = vmul.f32 %v1284_v39, %v153_v47  ;;  %v184_v59 = vmul.f32 %v1279_v35, %v153_v47 }
 0x351   :  { %384 = vrot.lane.b32.xlu1 %v1028_v22, %s1133_s21  ;;  %v1030_v24 = vpop.eup %1029 }
 0x352   :  { %v339_v27 = vadd.f32 1.0, %v1030_v24  ;;  %v201_v51 = vadd.f32 %v185_v49, %v132_v50  ;;  %v200_v61 = vadd.f32 %v184_v59, %v131_v60 }
 0x354   :  { %1031 = vrcp.f32 %v339_v27  ;;  %v366_v10 = vand.u32 2147483648, %v339_v27  ;;  %vm360_vm14 = vweird.f32 %v339_v27  ;;  %v364_v38 = vand.u32 2147483647, %v339_v27 }
 0x356   :  { %v367_v41 = vor.u32 1.1754944e-38, %v366_v10  ;;  %vm365_vm0 = vcmp.eq.f32.partialorder %v364_v38, 8.507059e+37  ;;  %v56_v10 = vld [vmem:[%s1480_s0 + $0x18] sm:$0xff] }
 0x35a   :  { %v1032_v28 = vpop.eup %1031 }
 0x35b   :  { %v356_v29 = vmul.f32 %v1032_v28, %v339_v27  ;;  %vm361_vm13 = vweird.f32 %v1032_v28 }
 0x35c   :  { %vm362_vm15 = vmor %vm360_vm14, %vm361_vm13 }
 0x35d   :  { %v357_v32 = vsub.f32 1.0, %v356_v29 }
 0x35f   :  { %v358_v33 = vmul.f32 %v1032_v28, %v357_v32 }
 0x361   :  { %v359_v36 = vadd.f32 %v1032_v28, %v358_v33 }
 0x363   :  { %v363_v40 = vsel %vm362_vm15, %v1032_v28, %v359_v36 }
 0x364   :  { %v368_v42 = vsel %vm365_vm0, %v367_v41, %v363_v40 }
 0x3c3   :  { %v385_v43 = vpop.permute.xlu1 %384 }
 0x3c4   :  { %v387_v44 = vmul.f32 %v385_v43, %v368_v42 }
 0x3c6   :  { %v388_v45 = vpack.c.bf16 %v387_v44, %v387_v44 }
 0x3c8   :  { %970 = vmatmul.msk.bf16.vlgmr.msrb.gmra.mxu0 %vm212_vm8, %v388_v45  ;;  %971 = vmatmul.msk.bf16.vlgmr.msrb.gmra.mxu1 %vm212_vm8, %v388_v45 }
 0x3c9   :  { %761 = vmatpush.bf16.msrb.mxu1 %v1172_v9  ;;  %748 = vmatpush.bf16.msrb.mxu0 %v1159_v3 }
 0x3cd   :  { %762 = vmatpush.bf16.msrb.mxu1 %v1188_v14  ;;  %749 = vmatpush.bf16.msrb.mxu0 %v1185_v13 }
 0x3d1   :  { %763 = vmatpush.bf16.msrb.mxu1 %v1208_v20  ;;  %750 = vmatpush.bf16.msrb.mxu0 %v1205_v19 }
 0x3d5   :  { %764 = vmatpush.bf16.msrb.mxu1 %v1229_v26  ;;  %751 = vmatpush.bf16.msrb.mxu0 %v1225_v25 }
 0x445   :  { %v401_v52 = vpop.f32.mrf.mxu0  ;;  %v414_v53 = vpop.f32.mrf.mxu1 }
 0x446   :  { %v419_v54 = vadd.f32 %v414_v53, %v201_v51  ;;  %v418_v62 = vadd.f32 %v401_v52, %v200_v61 }
 0x448   :  { %1033 = vtanh.f32 %v419_v54  ;;  %v972_v63 = vmul.f32 -1.442695, %v418_v62  ;;  %v973_v32 = vmul.f32 -1.442695, %v419_v54 }
 0x44a   :  { %1035 = vpow2.f32 %v972_v63 }
 0x44d   :  { %v403_v55 = vpop.f32.mrf.mxu0  ;;  %v416_v56 = vpop.f32.mrf.mxu1 }
 0x44e   :  { %v1034_v57 = vpop.eup %1033 }
 0x44f   :  { %461 = vrot.lane.b32.xlu1 %v1034_v57, %s1133_s21 }
 0x450   :  { %v1036_v0 = vpop.eup %1035 }
 0x451   :  { %v426_v1 = vadd.f32 1.0, %v1036_v0 }
 0x453   :  { %1037 = vrcp.f32 %v426_v1  ;;  %v439_v12 = vand.u32 2147483648, %v426_v1  ;;  %vm433_vm2 = vweird.f32 %v426_v1  ;;  %v437_v15 = vand.u32 2147483647, %v426_v1 }
 0x455   :  { %v440_v17 = vor.u32 1.1754944e-38, %v439_v12  ;;  %vm438_vm4 = vcmp.eq.f32.partialorder %v437_v15, 8.507059e+37 }
 0x457   :  { %78 = vperm.xlu1 %1003, %v56_v10  }
 0x459   :  { %v1038_v2 = vpop.eup %1037 }
 0x45a   :  { %v429_v4 = vmul.f32 %v1038_v2, %v426_v1  ;;  %vm434_vm1 = vweird.f32 %v1038_v2 }
 0x45b   :  { %vm435_vm3 = vmor %vm433_vm2, %vm434_vm1 }
 0x45c   :  { %v430_v5 = vsub.f32 1.0, %v429_v4 }
 0x45e   :  { %v431_v6 = vmul.f32 %v1038_v2, %v430_v5 }
 0x45f   :  { %1006 = vset.pattern.permute.xlu1 %v1132_v8 }
 0x460   :  { %v432_v11 = vadd.f32 %v1038_v2, %v431_v6 }
 0x462   :  { %v436_v16 = vsel %vm435_vm3, %v1038_v2, %v432_v11 }
 0x463   :  { %v441_v22 = vsel %vm438_vm4, %v440_v17, %v436_v16 }
 0x464   :  { %v459_v24 = vmul.f32 %v441_v22, %v1324_v21 }
 0x4c1   :  { %v462_v18 = vpop.permute.xlu1 %461 }
 0x4c2   :  { %v464_v23 = vmul.f32 %v462_v18, %v441_v22 }
 0x4c4   :  { %466 = vrot.lane.b32.xlu2 %v464_v23, %s1133_s21 }
 0x4cc   :  { %156 = vperm.xlu2 %1004, %v56_v10  }
 0x4d4   :  { %1007 = vset.pattern.permute.xlu2 %v1131_v7  ;;  %v79_v7 = vpop.permute.xlu1 %78 }
 0x4d5   :  { %v113_v51 = vmul.f32 %v1271_v31, %v79_v7 }
 0x51e   :  { %v467_v27 = vpop.permute.xlu2 %466 }
 0x51f   :  { %v1347_v28 = vadd.f32 %v467_v27, %v459_v24 }
 0x521   :  { %1039 = vtanh.f32 %v1347_v28 }
 0x522   :  { %1041 = vpow2.f32 %v973_v32  ;;  %v57_v32 = vld [vmem:[%s1480_s0 + $0x20] sm:$0xff] }
 0x526   :  { %v157_v52 = vpop.permute.xlu2 %156 }
 0x527   :  { %v1040_v29 = vpop.eup %1039  ;;  %v186_v56 = vmul.f32 %v1279_v35, %v157_v52 }
 0x528   :  { %472 = vrot.lane.b32.xlu0 %v1040_v29, %s1133_s21  ;;  %v1042_v33 = vpop.eup %1041 }
 0x529   :  { %v427_v36 = vadd.f32 1.0, %v1042_v33 }
 0x52b   :  { %1043 = vrcp.f32 %v427_v36  ;;  %v454_v43 = vand.u32 2147483648, %v427_v36  ;;  %vm448_vm6 = vweird.f32 %v427_v36  ;;  %v452_v44 = vand.u32 2147483647, %v427_v36 }
 0x52d   :  { %v455_v46 = vor.u32 1.1754944e-38, %v454_v43  ;;  %vm453_vm9 = vcmp.eq.f32.partialorder %v452_v44, 8.507059e+37 }
 0x531   :  { %v1044_v21 = vpop.eup %1043 }
 0x532   :  { %v444_v38 = vmul.f32 %v1044_v21, %v427_v36  ;;  %vm449_vm5 = vweird.f32 %v1044_v21 }
 0x533   :  { %vm450_vm7 = vmor %vm448_vm6, %vm449_vm5 }
 0x534   :  { %v445_v40 = vsub.f32 1.0, %v444_v38 }
 0x536   :  { %v446_v41 = vmul.f32 %v1044_v21, %v445_v40 }
 0x538   :  { %v447_v42 = vadd.f32 %v1044_v21, %v446_v41 }
 0x53a   :  { %v451_v45 = vsel %vm450_vm7, %v1044_v21, %v447_v42 }
 0x53b   :  { %v456_v47 = vsel %vm453_vm9, %v455_v46, %v451_v45 }
 0x59a   :  { %v473_v48 = vpop.permute.xlu0 %472 }
 0x59b   :  { %v475_v49 = vmul.f32 %v473_v48, %v456_v47 }
 0x59d   :  { %v476_v50 = vpack.c.bf16 %v475_v49, %v475_v49 }
 0x59f   :  { %974 = vmatmul.msk.bf16.vlgmr.msrb.gmra.mxu2 %vm212_vm8, %v476_v50  ;;  %975 = vmatmul.msk.bf16.vlgmr.msrb.gmra.mxu3 %vm212_vm8, %v476_v50 }
 0x5a0   :  { %849 = vmatpush.bf16.msrb.mxu3 %v1172_v9  ;;  %836 = vmatpush.bf16.msrb.mxu2 %v1159_v3  ;;  %v134_v9 = vadd.f32 %v1282_v37, %v113_v51  ;;  %v187_v3 = vmul.f32 %v1284_v39, %v157_v52 }
 0x5a2   :  { %v203_v53 = vadd.f32 %v187_v3, %v134_v9 }
 0x5a4   :  { %850 = vmatpush.bf16.msrb.mxu3 %v1188_v14  ;;  %837 = vmatpush.bf16.msrb.mxu2 %v1185_v13 }
 0x5a8   :  { %851 = vmatpush.bf16.msrb.mxu3 %v1208_v20  ;;  %838 = vmatpush.bf16.msrb.mxu2 %v1205_v19 }
 0x5ac   :  { %852 = vmatpush.bf16.msrb.mxu3 %v1229_v26  ;;  %839 = vmatpush.bf16.msrb.mxu2 %v1225_v25  ;;  %v112_v25 = vmul.f32 %v1269_v30, %v79_v7 }
 0x5ae   :  { %v133_v26 = vadd.f32 %v1277_v34, %v112_v25 }
 0x5b0   :  { %v202_v57 = vadd.f32 %v186_v56, %v133_v26 }
 0x622   :  { %v489_v14 = vpop.f32.mrf.mxu2  ;;  %v502_v54 = vpop.f32.mrf.mxu3 }
 0x623   :  { %v507_v13 = vadd.f32 %v502_v54, %v203_v53  ;;  %v506_v58 = vadd.f32 %v489_v14, %v202_v57 }
 0x625   :  { %1045 = vtanh.f32 %v507_v13  ;;  %v976_v59 = vmul.f32 -1.442695, %v506_v58  ;;  %v977_v24 = vmul.f32 -1.442695, %v507_v13 }
 0x627   :  { %1047 = vpow2.f32 %v976_v59 }
 0x62a   :  { %v491_v20 = vpop.f32.mrf.mxu2  ;;  %v504_v55 = vpop.f32.mrf.mxu3 }
 0x62b   :  { %v1046_v19 = vpop.eup %1045 }
 0x62c   :  { %549 = vrot.lane.b32.xlu0 %v1046_v19, %s1133_s21 }
 0x62d   :  { %v1048_v60 = vpop.eup %1047 }
 0x62e   :  { %v514_v61 = vadd.f32 1.0, %v1048_v60 }
 0x630   :  { %1049 = vrcp.f32 %v514_v61  ;;  %v527_v4 = vand.u32 2147483648, %v514_v61  ;;  %vm521_vm11 = vweird.f32 %v514_v61  ;;  %v525_v5 = vand.u32 2147483647, %v514_v61 }
 0x632   :  { %v528_v11 = vor.u32 1.1754944e-38, %v527_v4  ;;  %vm526_vm13 = vcmp.eq.f32.partialorder %v525_v5, 8.507059e+37 }
 0x634   :  { %83 = vperm.xlu0 %1005, %v57_v32  }
 0x636   :  { %v1050_v62 = vpop.eup %1049 }
 0x637   :  { %v517_v63 = vmul.f32 %v1050_v62, %v514_v61  ;;  %vm522_vm10 = vweird.f32 %v1050_v62 }
 0x638   :  { %vm523_vm12 = vmor %vm521_vm11, %vm522_vm10 }
 0x639   :  { %v518_v0 = vsub.f32 1.0, %v517_v63 }
 0x63b   :  { %v519_v1 = vmul.f32 %v1050_v62, %v518_v0 }
 0x63d   :  { %v520_v2 = vadd.f32 %v1050_v62, %v519_v1 }
 0x63f   :  { %v524_v6 = vsel %vm523_vm12, %v1050_v62, %v520_v2 }
 0x640   :  { %v529_v15 = vsel %vm526_vm13, %v528_v11, %v524_v6 }
 0x641   :  { %v547_v17 = vmul.f32 %v529_v15, %v1347_v28  ;;  %v58_v28 = vld [vmem:[%s1480_s0 + $0x28] sm:$0xff] }
 0x642   :  { %88 = vperm.xlu0 %1005, %v58_v28  }
 0x64a   :  { %1008 = vset.pattern.permute.xlu0 %v1132_v8 }
 0x69e   :  { %v550_v12 = vpop.permute.xlu0 %549 }
 0x69f   :  { %v552_v16 = vmul.f32 %v550_v12, %v529_v15 }
 0x6a1   :  { %554 = vrot.lane.b32.xlu1 %v552_v16, %s1133_s21 }
 0x6a6   :  { %v84_v48 = vpop.permute.xlu0 %83 }
 0x6a7   :  { %v114_v8 = vmul.f32 %v1269_v30, %v84_v48  ;;  %v115_v49 = vmul.f32 %v1271_v31, %v84_v48 }
 0x6a9   :  { %160 = vperm.xlu1 %1006, %v57_v32   ;;  %v135_v7 = vadd.f32 %v1277_v34, %v114_v8  ;;  %v136_v51 = vadd.f32 %v1282_v37, %v115_v49 }
 0x713   :  { %v555_v18 = vpop.permute.xlu1 %554 }
 0x714   :  { %v1375_v22 = vadd.f32 %v555_v18, %v547_v17 }
 0x716   :  { %1051 = vtanh.f32 %v1375_v22 }
 0x717   :  { %1053 = vpow2.f32 %v977_v24 }
 0x71b   :  { %v161_v50 = vpop.permute.xlu1 %160 }
 0x71c   :  { %v1052_v23 = vpop.eup %1051  ;;  %v188_v52 = vmul.f32 %v1279_v35, %v161_v50  ;;  %v189_v9 = vmul.f32 %v1284_v39, %v161_v50 }
 0x71d   :  { %560 = vrot.lane.b32.xlu2 %v1052_v23, %s1133_s21  ;;  %v1054_v27 = vpop.eup %1053 }
 0x71e   :  { %v515_v29 = vadd.f32 1.0, %v1054_v27  ;;  %v204_v3 = vadd.f32 %v188_v52, %v135_v7  ;;  %v205_v53 = vadd.f32 %v189_v9, %v136_v51 }
 0x720   :  { %1055 = vrcp.f32 %v515_v29  ;;  %v542_v40 = vand.u32 2147483648, %v515_v29  ;;  %vm536_vm15 = vweird.f32 %v515_v29  ;;  %v540_v41 = vand.u32 2147483647, %v515_v29 }
 0x722   :  { %v543_v43 = vor.u32 1.1754944e-38, %v542_v40  ;;  %vm541_vm1 = vcmp.eq.f32.partialorder %v540_v41, 8.507059e+37 }
 0x726   :  { %v1056_v33 = vpop.eup %1055 }
 0x727   :  { %v532_v36 = vmul.f32 %v1056_v33, %v515_v29  ;;  %vm537_vm14 = vweird.f32 %v1056_v33 }
 0x728   :  { %vm538_vm0 = vmor %vm536_vm15, %vm537_vm14 }
 0x729   :  { %v533_v10 = vsub.f32 1.0, %v532_v36 }
 0x72b   :  { %v534_v21 = vmul.f32 %v1056_v33, %v533_v10 }
 0x72d   :  { %v535_v38 = vadd.f32 %v1056_v33, %v534_v21 }
 0x72f   :  { %v539_v42 = vsel %vm538_vm0, %v1056_v33, %v535_v38 }
 0x730   :  { %v544_v44 = vsel %vm541_vm1, %v543_v43, %v539_v42  ;;  %v89_v42 = vpop.permute.xlu0 %88 }
 0x731   :  { %v116_v52 = vmul.f32 %v1269_v30, %v89_v42 }
 0x777   :  { %v561_v45 = vpop.permute.xlu2 %560 }
 0x778   :  { %v563_v46 = vmul.f32 %v561_v45, %v544_v44  ;;  %v117_v44 = vmul.f32 %v1271_v31, %v89_v42 }
 0x77a   :  { %v564_v47 = vpack.c.bf16 %v563_v46, %v563_v46  ;;  %v138_v46 = vadd.f32 %v1282_v37, %v117_v44 }
 0x77c   :  { %978 = vmatmul.msk.bf16.vlgmr.msra.gmra.mxu0 %vm212_vm8, %v564_v47  ;;  %979 = vmatmul.msk.bf16.vlgmr.msra.gmra.mxu1 %vm212_vm8, %v564_v47 }
 0x7f9   :  { %v577_v14 = vpop.f32.mrf.mxu0  ;;  %v590_v54 = vpop.f32.mrf.mxu1 }
 0x7fa   :  { %v594_v13 = vadd.f32 %v577_v14, %v204_v3  ;;  %v595_v20 = vadd.f32 %v590_v54, %v205_v53  ;;  %v137_v3 = vadd.f32 %v1277_v34, %v116_v52 }
 0x7fc   :  { %1057 = vtanh.f32 %v595_v20  ;;  %v980_v26 = vmul.f32 -1.442695, %v594_v13  ;;  %v981_v17 = vmul.f32 -1.442695, %v595_v20 }
 0x7fe   :  { %1059 = vpow2.f32 %v980_v26 }
 0x801   :  { %v579_v55 = vpop.f32.mrf.mxu0  ;;  %v592_v19 = vpop.f32.mrf.mxu1 }
 0x802   :  { %v1058_v25 = vpop.eup %1057 }
 0x803   :  { %637 = vrot.lane.b32.xlu2 %v1058_v25, %s1133_s21 }
 0x804   :  { %v1060_v56 = vpop.eup %1059 }
 0x805   :  { %v602_v57 = vadd.f32 1.0, %v1060_v56 }
 0x807   :  { %1061 = vrcp.f32 %v602_v57  ;;  %v615_v63 = vand.u32 2147483648, %v602_v57  ;;  %vm609_vm3 = vweird.f32 %v602_v57  ;;  %v613_v0 = vand.u32 2147483647, %v602_v57 }
 0x809   :  { %v616_v2 = vor.u32 1.1754944e-38, %v615_v63  ;;  %vm614_vm5 = vcmp.eq.f32.partialorder %v613_v0, 8.507059e+37 }
 0x80d   :  { %v1062_v58 = vpop.eup %1061 }
 0x80e   :  { %v605_v59 = vmul.f32 %v1062_v58, %v602_v57  ;;  %vm610_vm2 = vweird.f32 %v1062_v58 }
 0x80f   :  { %vm611_vm4 = vmor %vm609_vm3, %vm610_vm2 }
 0x810   :  { %v606_v60 = vsub.f32 1.0, %v605_v59 }
 0x812   :  { %v607_v61 = vmul.f32 %v1062_v58, %v606_v60 }
 0x814   :  { %v608_v62 = vadd.f32 %v1062_v58, %v607_v61 }
 0x816   :  { %v612_v1 = vsel %vm611_vm4, %v1062_v58, %v608_v62 }
 0x817   :  { %v617_v5 = vsel %vm614_vm5, %v616_v2, %v612_v1 }
 0x818   :  { %v635_v11 = vmul.f32 %v617_v5, %v1375_v22 }
 0x85d   :  { %v638_v4 = vpop.permute.xlu2 %637 }
 0x85e   :  { %v640_v6 = vmul.f32 %v638_v4, %v617_v5 }
 0x860   :  { %642 = vrot.lane.b32.xlu1 %v640_v6, %s1133_s21 }
 0x868   :  { %164 = vperm.xlu1 %1006, %v58_v28  }
 0x8d2   :  { %v643_v12 = vpop.permute.xlu1 %642 }
 0x8d3   :  { %v1397_v15 = vadd.f32 %v643_v12, %v635_v11  ;;  %v59_v12 = vld [vmem:[%s1480_s0 + $0x30] sm:$0xff] }
 0x8d5   :  { %1063 = vtanh.f32 %v1397_v15 }
 0x8d6   :  { %1065 = vpow2.f32 %v981_v17 }
 0x8da   :  { %v165_v43 = vpop.permute.xlu1 %164 }
 0x8db   :  { %v1064_v16 = vpop.eup %1063  ;;  %v191_v45 = vmul.f32 %v1284_v39, %v165_v43  ;;  %v190_v9 = vmul.f32 %v1279_v35, %v165_v43 }
 0x8dc   :  { %648 = vrot.lane.b32.xlu2 %v1064_v16, %s1133_s21  ;;  %v1066_v18 = vpop.eup %1065 }
 0x8dd   :  { %v603_v23 = vadd.f32 1.0, %v1066_v18  ;;  %v207_v47 = vadd.f32 %v191_v45, %v138_v46  ;;  %v206_v53 = vadd.f32 %v190_v9, %v137_v3 }
 0x8df   :  { %1067 = vrcp.f32 %v603_v23  ;;  %v630_v22 = vand.u32 2147483648, %v603_v23  ;;  %vm624_vm7 = vweird.f32 %v603_v23  ;;  %v628_v33 = vand.u32 2147483647, %v603_v23 }
 0x8e1   :  { %v631_v10 = vor.u32 1.1754944e-38, %v630_v22  ;;  %vm629_vm10 = vcmp.eq.f32.partialorder %v628_v33, 8.507059e+37 }
 0x8e5   :  { %v1068_v24 = vpop.eup %1067 }
 0x8e6   :  { %v620_v27 = vmul.f32 %v1068_v24, %v603_v23  ;;  %vm625_vm6 = vweird.f32 %v1068_v24 }
 0x8e7   :  { %vm626_vm9 = vmor %vm624_vm7, %vm625_vm6 }
 0x8e8   :  { %v621_v29 = vsub.f32 1.0, %v620_v27 }
 0x8ea   :  { %v622_v32 = vmul.f32 %v1068_v24, %v621_v29 }
 0x8ec   :  { %v623_v28 = vadd.f32 %v1068_v24, %v622_v32 }
 0x8ee   :  { %v627_v36 = vsel %vm626_vm9, %v1068_v24, %v623_v28 }
 0x8ef   :  { %v632_v21 = vsel %vm629_vm10, %v631_v10, %v627_v36 }
 0x936   :  { %v649_v38 = vpop.permute.xlu2 %648 }
 0x937   :  { %v651_v40 = vmul.f32 %v649_v38, %v632_v21 }
 0x939   :  { %v652_v41 = vpack.c.bf16 %v651_v40, %v651_v40 }
 0x93b   :  { %982 = vmatmul.msk.bf16.vlgmr.msra.gmra.mxu2 %vm212_vm8, %v652_v41  ;;  %983 = vmatmul.msk.bf16.vlgmr.msra.gmra.mxu3 %vm212_vm8, %v652_v41 }
 0x9be   :  { %v665_v48 = vpop.f32.mrf.mxu2  ;;  %v678_v8 = vpop.f32.mrf.mxu3 }
 0x9bf   :  { %v683_v49 = vadd.f32 %v678_v8, %v207_v47  ;;  %v682_v14 = vadd.f32 %v665_v48, %v206_v53 }
 0x9c1   :  { %1069 = vtanh.f32 %v683_v49  ;;  %v984_v54 = vmul.f32 -1.442695, %v682_v14  ;;  %v985_v5 = vmul.f32 -1.442695, %v683_v49 }
 0x9c3   :  { %1071 = vpow2.f32 %v984_v54 }
 0x9c6   :  { %v667_v50 = vpop.f32.mrf.mxu2  ;;  %v680_v7 = vpop.f32.mrf.mxu3 }
 0x9c7   :  { %v1070_v51 = vpop.eup %1069 }
 0x9c8   :  { %725 = vrot.lane.b32.xlu2 %v1070_v51, %s1133_s21 }
 0x9c9   :  { %v1072_v13 = vpop.eup %1071 }
 0x9ca   :  { %v690_v20 = vadd.f32 1.0, %v1072_v13 }
 0x9cc   :  { %1073 = vrcp.f32 %v690_v20  ;;  %v703_v57 = vand.u32 2147483648, %v690_v20  ;;  %vm697_vm12 = vweird.f32 %v690_v20  ;;  %v701_v58 = vand.u32 2147483647, %v690_v20 }
 0x9ce   :  { %v704_v60 = vor.u32 1.1754944e-38, %v703_v57  ;;  %vm702_vm14 = vcmp.eq.f32.partialorder %v701_v58, 8.507059e+37 }
 0x9d0   :  { %93 = vperm.xlu2 %1007, %v59_v12  }
 0x9d2   :  { %v1074_v55 = vpop.eup %1073 }
 0x9d3   :  { %v693_v19 = vmul.f32 %v1074_v55, %v690_v20  ;;  %vm698_vm11 = vweird.f32 %v1074_v55 }
 0x9d4   :  { %vm699_vm13 = vmor %vm697_vm12, %vm698_vm11 }
 0x9d5   :  { %v694_v25 = vsub.f32 1.0, %v693_v19 }
 0x9d7   :  { %v695_v26 = vmul.f32 %v1074_v55, %v694_v25 }
 0x9d9   :  { %v696_v56 = vadd.f32 %v1074_v55, %v695_v26 }
 0x9db   :  { %v700_v59 = vsel %vm699_vm13, %v1074_v55, %v696_v56 }
 0x9dc   :  { %v705_v62 = vsel %vm702_vm14, %v704_v60, %v700_v59 }
 0x9dd   :  { %v723_v0 = vmul.f32 %v705_v62, %v1397_v15  ;;  %v60_v15 = vld [vmem:[%s1480_s0 + $0x38] sm:$0xff] }
 0xa22   :  { %v726_v61 = vpop.permute.xlu2 %725 }
 0xa23   :  { %v728_v63 = vmul.f32 %v726_v61, %v705_v62 }
 0xa25   :  { %730 = vrot.lane.b32.xlu0 %v728_v63, %s1133_s21 }
 0xa2a   :  { %v94_v21 = vpop.permute.xlu2 %93 }
 0xa2b   :  { %v118_v38 = vmul.f32 %v1269_v30, %v94_v21  ;;  %v119_v40 = vmul.f32 %v1271_v31, %v94_v21 }
 0xa2d   :  { %168 = vperm.xlu0 %1008, %v59_v12   ;;  %v139_v44 = vadd.f32 %v1277_v34, %v118_v38  ;;  %v140_v45 = vadd.f32 %v1282_v37, %v119_v40 }
 0xa35   :  { %172 = vperm.xlu0 %1008, %v60_v15  }
 0xa97   :  { %v731_v1 = vpop.permute.xlu0 %730 }
 0xa98   :  { %v1412_v2 = vadd.f32 %v731_v1, %v723_v0 }
 0xa9a   :  { %1075 = vtanh.f32 %v1412_v2 }
 0xa9b   :  { %1077 = vpow2.f32 %v985_v5 }
 0xa9f   :  { %v169_v41 = vpop.permute.xlu0 %168 }
 0xaa0   :  { %v1076_v4 = vpop.eup %1075  ;;  %v192_v42 = vmul.f32 %v1279_v35, %v169_v41  ;;  %v193_v43 = vmul.f32 %v1284_v39, %v169_v41 }
 0xaa1   :  { %736 = vrot.lane.b32.xlu1 %v1076_v4, %s1133_s21  ;;  %v1078_v6 = vpop.eup %1077 }
 0xaa2   :  { %v691_v11 = vadd.f32 1.0, %v1078_v6  ;;  %v208_v46 = vadd.f32 %v192_v42, %v139_v44  ;;  %v209_v47 = vadd.f32 %v193_v43, %v140_v45 }
 0xaa4   :  { %1079 = vrcp.f32 %v691_v11  ;;  %v718_v27 = vand.u32 2147483648, %v691_v11  ;;  %vm712_vm0 = vweird.f32 %v691_v11  ;;  %v716_v29 = vand.u32 2147483647, %v691_v11 }
 0xaa6   :  { %v719_v28 = vor.u32 1.1754944e-38, %v718_v27  ;;  %vm717_vm2 = vcmp.eq.f32.partialorder %v716_v29, 8.507059e+37 }
 0xaaa   :  { %v1080_v16 = vpop.eup %1079 }
 0xaab   :  { %v708_v17 = vmul.f32 %v1080_v16, %v691_v11  ;;  %vm713_vm15 = vweird.f32 %v1080_v16 }
 0xaac   :  { %vm714_vm1 = vmor %vm712_vm0, %vm713_vm15 }
 0xaad   :  { %v709_v18 = vsub.f32 1.0, %v708_v17 }
 0xaaf   :  { %v710_v23 = vmul.f32 %v1080_v16, %v709_v18 }
 0xab1   :  { %v711_v24 = vadd.f32 %v1080_v16, %v710_v23 }
 0xab3   :  { %v715_v32 = vsel %vm714_vm1, %v1080_v16, %v711_v24 }
 0xab4   :  { %v720_v22 = vsel %vm717_vm2, %v719_v28, %v715_v32 }
 0xb13   :  { %v737_v33 = vpop.permute.xlu1 %736 }
 0xb14   :  { %v739_v36 = vmul.f32 %v737_v33, %v720_v22  ;;  %v173_v22 = vpop.permute.xlu0 %172 }
 0xb16   :  { %v740_v10 = vpack.c.bf16 %v739_v36, %v739_v36  ;;  %v195_v36 = vmul.f32 %v1284_v39, %v173_v22 }
 0xb18   :  { %986 = vmatmul.msk.bf16.vlgmr.msrb.gmra.mxu0 %vm212_vm8, %v740_v10  ;;  %987 = vmatmul.msk.bf16.vlgmr.msrb.gmra.mxu1 %vm212_vm8, %v740_v10 }
 0xb95   :  { %v753_v48 = vpop.f32.mrf.mxu0  ;;  %v766_v8 = vpop.f32.mrf.mxu1 }
 0xb96   :  { %v770_v49 = vadd.f32 %v753_v48, %v208_v46  ;;  %v771_v50 = vadd.f32 %v766_v8, %v209_v47 }
 0xb98   :  { %1081 = vtanh.f32 %v771_v50  ;;  %v988_v9 = vmul.f32 -1.442695, %v770_v49  ;;  %v989_v0 = vmul.f32 -1.442695, %v771_v50 }
 0xb9a   :  { %1083 = vpow2.f32 %v988_v9 }
 0xb9d   :  { %v755_v7 = vpop.f32.mrf.mxu0  ;;  %v768_v51 = vpop.f32.mrf.mxu1 }
 0xb9e   :  { %v1082_v52 = vpop.eup %1081 }
 0xb9f   :  { %813 = vrot.lane.b32.xlu1 %v1082_v52, %s1133_s21 }
 0xba0   :  { %v1084_v3 = vpop.eup %1083 }
 0xba1   :  { %v778_v53 = vadd.f32 1.0, %v1084_v3 }
 0xba3   :  { %1085 = vrcp.f32 %v778_v53  ;;  %v791_v19 = vand.u32 2147483648, %v778_v53  ;;  %vm785_vm4 = vweird.f32 %v778_v53  ;;  %v789_v25 = vand.u32 2147483647, %v778_v53 }
 0xba5   :  { %v792_v56 = vor.u32 1.1754944e-38, %v791_v19  ;;  %vm790_vm6 = vcmp.eq.f32.partialorder %v789_v25, 8.507059e+37  ;;  %v47_v19 = vld [vmem:[%s1481_s1 + $0xb0] sm:$0xff]  ;;  %v46_v25 = vld [vmem:[%s1481_s1 + $0xa0] sm:$0xff] }
 0xba9   :  { %v1086_v14 = vpop.eup %1085 }
 0xbaa   :  { %v781_v54 = vmul.f32 %v1086_v14, %v778_v53  ;;  %vm786_vm3 = vweird.f32 %v1086_v14 }
 0xbab   :  { %vm787_vm5 = vmor %vm785_vm4, %vm786_vm3  ;;  %vm942_vm4 = vcmask 9216  }
 0xbac   :  { %v782_v13 = vsub.f32 1.0, %v781_v54  ;;  %v51_v54 = vld [vmem:[%s1481_s1 + $0xf0] sm:$0xff] }
 0xbae   :  { %v783_v20 = vmul.f32 %v1086_v14, %v782_v13  ;;  %v50_v13 = vld [vmem:[%s1481_s1 + $0xe0] sm:$0xff] }
 0xbb0   :  { %v784_v55 = vadd.f32 %v1086_v14, %v783_v20  ;;  %v49_v20 = vld [vmem:[%s1481_s1 + $0xd0] sm:$0xff] }
 0xbb2   :  { %v788_v26 = vsel %vm787_vm5, %v1086_v14, %v784_v55  ;;  %v52_v14 = vld [vmem:[%s1481_s1 + $0x100] sm:$0xff] }
 0xbb3   :  { %v793_v58 = vsel %vm790_vm6, %v792_v56, %v788_v26  ;;  %930 = vmatpush.msra.mxu0 %v52_v14  ;;  %v48_v55 = vld [vmem:[%s1481_s1 + $0xc0] sm:$0xff] }
 0xbb4   :  { %v811_v60 = vmul.f32 %v793_v58, %v1412_v2 }
 0xbb5   :  { %931 = vmatpush.msra.mxu0 %v51_v54 }
 0xbb7   :  { %932 = vmatpush.msra.mxu0 %v50_v13 }
 0xbb9   :  { %933 = vmatpush.msra.mxu0 %v49_v20 }
 0xbbb   :  { %934 = vmatpush.msra.mxu0 %v48_v55 }
 0xbbd   :  { %935 = vmatpush.msra.mxu0 %v47_v19 }
 0xbbf   :  { %936 = vmatpush.msra.mxu0 %v46_v25 }
 0xc11   :  { %v814_v57 = vpop.permute.xlu1 %813 }
 0xc12   :  { %v816_v59 = vmul.f32 %v814_v57, %v793_v58 }
 0xc14   :  { %818 = vrot.lane.b32.xlu2 %v816_v59, %s1133_s21 }
 0xc1c   :  { %98 = vperm.xlu2 %1007, %v60_v15  }
 0xc6e   :  { %v819_v61 = vpop.permute.xlu2 %818 }
 0xc6f   :  { %v1433_v62 = vadd.f32 %v819_v61, %v811_v60 }
 0xc71   :  { %1087 = vtanh.f32 %v1433_v62 }
 0xc72   :  { %1089 = vpow2.f32 %v989_v0 }
 0xc76   :  { %v99_v32 = vpop.permute.xlu2 %98 }
 0xc77   :  { %v1088_v63 = vpop.eup %1087  ;;  %v121_v28 = vmul.f32 %v1271_v31, %v99_v32  ;;  %v120_v44 = vmul.f32 %v1269_v30, %v99_v32  ;;  %v194_v31 = vmul.f32 %v1279_v35, %v173_v22 }
 0xc78   :  { %824 = vrot.lane.b32.xlu1 %v1088_v63, %s1133_s21  ;;  %v1090_v1 = vpop.eup %1089  ;;  %v45_v63 = vld [vmem:[%s1481_s1 + $0x90] sm:$0xff] }
 0xc79   :  { %v779_v4 = vadd.f32 1.0, %v1090_v1  ;;  %v142_v33 = vadd.f32 %v1282_v37, %v121_v28  ;;  %v141_v45 = vadd.f32 %v1277_v34, %v120_v44  ;;  %937 = vmatpush.msra.mxu0 %v45_v63 }
 0xc7b   :  { %1091 = vrcp.f32 %v779_v4  ;;  %v806_v2 = vand.u32 2147483648, %v779_v4  ;;  %vm800_vm9 = vweird.f32 %v779_v4  ;;  %v804_v16 = vand.u32 2147483647, %v779_v4 }
 0xc7c   :  { %v211_v10 = vadd.f32 %v195_v36, %v142_v33  ;;  %v210_v46 = vadd.f32 %v194_v31, %v141_v45 }
 0xc7d   :  { %v807_v18 = vor.u32 1.1754944e-38, %v806_v2  ;;  %vm805_vm11 = vcmp.eq.f32.partialorder %v804_v16, 8.507059e+37 }
 0xc81   :  { %v1092_v5 = vpop.eup %1091 }
 0xc82   :  { %v796_v6 = vmul.f32 %v1092_v5, %v779_v4  ;;  %vm801_vm7 = vweird.f32 %v1092_v5 }
 0xc83   :  { %vm802_vm10 = vmor %vm800_vm9, %vm801_vm7 }
 0xc84   :  { %v797_v11 = vsub.f32 1.0, %v796_v6 }
 0xc86   :  { %v798_v12 = vmul.f32 %v1092_v5, %v797_v11 }
 0xc88   :  { %v799_v15 = vadd.f32 %v1092_v5, %v798_v12 }
 0xc8a   :  { %v803_v17 = vsel %vm802_vm10, %v1092_v5, %v799_v15 }
 0xc8b   :  { %v808_v23 = vsel %vm805_vm11, %v807_v18, %v803_v17  ;;  %v963_v18 = vld [vmem:[%s1481_s1 + $0x83] ss:$8 sm:$0x3] }
 0xcea   :  { %v825_v24 = vpop.permute.xlu1 %824 }
 0xceb   :  { %v827_v27 = vmul.f32 %v825_v24, %v808_v23  ;;  %v917_v23 = vperm.slane %v963_v18, 0 }
 0xced   :  { %v828_v29 = vpack.c.bf16 %v827_v27, %v827_v27 }
 0xcef   :  { %990 = vmatmul.msk.bf16.vlgmr.msrb.gmra.mxu2 %vm212_vm8, %v828_v29  ;;  %991 = vmatmul.msk.bf16.vlgmr.msrb.gmra.mxu3 %vm212_vm8, %v828_v29 }
 0xd72   :  { %v841_v21 = vpop.f32.mrf.mxu2  ;;  %v854_v38 = vpop.f32.mrf.mxu3 }
 0xd73   :  { %v859_v40 = vadd.f32 %v854_v38, %v211_v10  ;;  %v858_v37 = vadd.f32 %v841_v21, %v210_v46 }
 0xd75   :  { %1093 = vtanh.f32 %v859_v40  ;;  %v992_v47 = vmul.f32 -1.442695, %v858_v37  ;;  %v993_v59 = vmul.f32 -1.442695, %v859_v40 }
 0xd77   :  { %1095 = vpow2.f32 %v992_v47 }
 0xd7a   :  { %v843_v41 = vpop.f32.mrf.mxu2  ;;  %v856_v42 = vpop.f32.mrf.mxu3 }
 0xd7b   :  { %v1094_v43 = vpop.eup %1093 }
 0xd7c   :  { %901 = vrot.lane.b32.xlu1 %v1094_v43, %s1133_s21 }
 0xd7d   :  { %v1096_v39 = vpop.eup %1095 }
 0xd7e   :  { %v866_v48 = vadd.f32 1.0, %v1096_v39 }
 0xd80   :  { %1097 = vrcp.f32 %v866_v48  ;;  %v879_v52 = vand.u32 2147483648, %v866_v48  ;;  %vm873_vm13 = vweird.f32 %v866_v48  ;;  %v877_v30 = vand.u32 2147483647, %v866_v48 }
 0xd82   :  { %v880_v9 = vor.u32 1.1754944e-38, %v879_v52  ;;  %vm878_vm15 = vcmp.eq.f32.partialorder %v877_v30, 8.507059e+37 }
 0xd86   :  { %v1098_v8 = vpop.eup %1097 }
 0xd87   :  { %v869_v49 = vmul.f32 %v1098_v8, %v866_v48  ;;  %vm874_vm12 = vweird.f32 %v1098_v8 }
 0xd88   :  { %vm875_vm14 = vmor %vm873_vm13, %vm874_vm12 }
 0xd89   :  { %v870_v50 = vsub.f32 1.0, %v869_v49 }
 0xd8b   :  { %v871_v7 = vmul.f32 %v1098_v8, %v870_v50 }
 0xd8d   :  { %v872_v51 = vadd.f32 %v1098_v8, %v871_v7 }
 0xd8f   :  { %v876_v34 = vsel %vm875_vm14, %v1098_v8, %v872_v51 }
 0xd90   :  { %v881_v3 = vsel %vm878_vm15, %v880_v9, %v876_v34 }
 0xd91   :  { %v899_v26 = vmul.f32 %v881_v3, %v1433_v62 }
 0xdee   :  { %v902_v35 = vpop.permute.xlu1 %901 }
 0xdef   :  { %v904_v53 = vmul.f32 %v902_v35, %v881_v3 }
 0xdf1   :  { %906 = vrot.lane.b32.xlu2 %v904_v53, %s1133_s21 }
 0xe4b   :  { %v907_v56 = vpop.permute.xlu2 %906 }
 0xe4c   :  { %v909_v57 = vadd.f32 %v907_v56, %v899_v26 }
 0xe4e   :  { %1099 = vtanh.f32 %v909_v57 }
 0xe4f   :  { %1101 = vpow2.f32 %v993_v59 }
 0xe54   :  { %v1100_v58 = vpop.eup %1099 }
 0xe55   :  { %912 = vrot.lane.b32.xlu0 %v1100_v58, %s1133_s21  ;;  %v1102_v60 = vpop.eup %1101 }
 0xe56   :  { %v867_v61 = vadd.f32 1.0, %v1102_v60 }
 0xe58   :  { %1103 = vrcp.f32 %v867_v61  ;;  %v894_v6 = vand.u32 2147483648, %v867_v61  ;;  %vm888_vm1 = vweird.f32 %v867_v61  ;;  %v892_v11 = vand.u32 2147483647, %v867_v61 }
 0xe5a   :  { %v895_v15 = vor.u32 1.1754944e-38, %v894_v6  ;;  %vm893_vm3 = vcmp.eq.f32.partialorder %v892_v11, 8.507059e+37 }
 0xe5e   :  { %v1104_v0 = vpop.eup %1103 }
 0xe5f   :  { %v884_v1 = vmul.f32 %v1104_v0, %v867_v61  ;;  %vm889_vm0 = vweird.f32 %v1104_v0 }
 0xe60   :  { %vm890_vm2 = vmor %vm888_vm1, %vm889_vm0 }
 0xe61   :  { %v885_v4 = vsub.f32 1.0, %v884_v1 }
 0xe63   :  { %v886_v62 = vmul.f32 %v1104_v0, %v885_v4 }
 0xe65   :  { %v887_v5 = vadd.f32 %v1104_v0, %v886_v62 }
 0xe67   :  { %v891_v12 = vsel %vm890_vm2, %v1104_v0, %v887_v5 }
 0xe68   :  { %v896_v2 = vsel %vm893_vm3, %v895_v15, %v891_v12 }
 0xec7   :  { %v913_v16 = vpop.permute.xlu0 %912 }
 0xec8   :  { %v915_v17 = vmul.f32 %v913_v16, %v896_v2 }
 0xeca   :  { %994 = vmatmul.msk.f32.vlgmr.msra.gmra.mxu0 %vm212_vm8, %v915_v17 }
 0xf47   :  { %v939_v24 = vpop.f32.mrf.mxu0 }
 0xf48   :  { %v940_v27 = vadd.f32 %v939_v24, %v917_v23 }
 0xf4a   :  { %943 = vst.msk [vmem:[#allocation2] sm:$0x3] %vm942_vm4, %v940_v27 }
 0xf4b   :  { %954 = dma.vmem_to_hbm [thread:$0]  %s950_s26, 32, %s952_s29, [#allocation3]  }
 0xf4c   :  { %1129 = dma.done.wait [#allocation3], 32  }
 0xf4d   :  { %1130 = vsyncadd [#allocation3], 4294967264 }
 0xf4e   :  { %959 = vsyncpa [#allocation3], 1 }

</bundles_post_ra>
